<compile_context>
chip_gen: v7x
topology: tpu7x:2x2x1
jax: 0.10.0
libtpu: 0.0.40
codegen_flags: <defaults>
</compile_context>

<pallas_src>
import functools

import jax
import jax.numpy as jnp
from jax.experimental import pallas as pl
from jax.experimental.pallas import tpu as pltpu

P_DROP = 0.6
KEEP_PROB = 1.0 - P_DROP
# Integer dropout threshold: keep element iff bits < KEEP_THRESHOLD (bits ~ U[0, 2^31-1)).
KEEP_THRESHOLD_I32 = int(KEEP_PROB * (2**31 - 1))


def _round_up(x, m):
    return (x + m - 1) // m * m


def _dropout_linear_kernel(*refs, training, keep_threshold, inv_keep_prob):
    """One (tm, tn) output tile; accumulates over the k (= input-feature) grid axis.

    training=True : refs = (rb_ref, x_ref, wt_ref, b_ref, o_ref, acc_ref)
    training=False: refs = (x_ref, wt_ref, b_ref, o_ref, acc_ref)

      rb_ref  : (tm, tk) int32   random bits for the dropout mask
      x_ref   : (tm, tk) f32/bf16 activations
      wt_ref  : (tk, tn) f32/bf16 weight, already transposed to (IN, OUT)
      b_ref   : (1, tn)  f32     bias
      o_ref   : (tm, tn) f32     output tile
      acc_ref : (tm, tn) f32     VMEM accumulator scratch
    """
    if training:
        rb_ref, x_ref, wt_ref, b_ref, o_ref, acc_ref = refs
    else:
        x_ref, wt_ref, b_ref, o_ref, acc_ref = refs

    k = pl.program_id(2)

    @pl.when(k == 0)
    def _():
        acc_ref[...] = jnp.zeros_like(acc_ref)

    x = x_ref[...]
    if training:
        # Inverted dropout: single integer threshold compare + select (zero out dropped).
        keep = rb_ref[...] < keep_threshold
        x = jnp.where(keep, x, jnp.zeros_like(x))

    # MXU matmul, f32 accumulation. Weight is pre-transposed -> no in-kernel transpose.
    acc_ref[...] += jnp.dot(x, wt_ref[...], preferred_element_type=jnp.float32)

    @pl.when(k == pl.num_programs(2) - 1)
    def _():
        y = acc_ref[...]
        if training:
            # 1/keep_prob rescale folded into the (smaller) post-matmul epilogue.
            y = y * inv_keep_prob
        y = y + b_ref[...]
        o_ref[...] = y.astype(o_ref.dtype)


def single_model_forward(x, w, b, dropout_bits=None, *, training=True,
                         compute_dtype=jnp.float32):
    """Forward pass of SingleModel: Linear(Dropout(x)).

    x            : (B, IN)  activations
    w            : (OUT, IN) torch.nn.Linear weight layout
    b            : (OUT,)   bias
    dropout_bits : (B, IN) int32 uniform random bits (required iff training=True)
    compute_dtype: dtype of the MXU operands (use jnp.bfloat16 on v6e/v7x at scale)
    """
    B, IN = x.shape
    OUT, IN_w = w.shape
    assert IN == IN_w
    if training:
        assert dropout_bits is not None and dropout_bits.shape == (B, IN)

    out_dtype = x.dtype

    # Tile sizes: lane-dense (multiples of 128 on the last dim), sublane-aligned on M.
    tm = min(256, _round_up(B, 8))
    tn = min(256, _round_up(OUT, 128))
    tk = min(512, _round_up(IN, 128))
    Mp = _round_up(B, tm)
    Np = _round_up(OUT, tn)
    Kp = _round_up(IN, tk)

    # Zero-padding keeps the matmul exact (padded K columns/rows contribute 0).
    xp = jnp.pad(x, ((0, Mp - B), (0, Kp - IN))).astype(compute_dtype)
    wtp = jnp.pad(w.T, ((0, Kp - IN), (0, Np - OUT))).astype(compute_dtype)
    bp = jnp.pad(b.astype(jnp.float32), (0, Np - OUT)).reshape(1, Np)

    grid = (Mp // tm, Np // tn, Kp // tk)

    in_specs = []
    args = []
    if training:
        rbp = jnp.pad(dropout_bits, ((0, Mp - B), (0, Kp - IN)))
        in_specs.append(pl.BlockSpec((tm, tk), lambda m, n, k: (m, k)))
        args.append(rbp)
    in_specs += [
        pl.BlockSpec((tm, tk), lambda m, n, k: (m, k)),   # x
        pl.BlockSpec((tk, tn), lambda m, n, k: (k, n)),   # w.T
        pl.BlockSpec((1, tn), lambda m, n, k: (0, n)),    # bias
    ]
    args += [xp, wtp, bp]

    kernel = functools.partial(
        _dropout_linear_kernel,
        training=training,
        keep_threshold=KEEP_THRESHOLD_I32,
        inv_keep_prob=1.0 / KEEP_PROB,
    )

    out_padded = pl.pallas_call(
        kernel,
        out_shape=jax.ShapeDtypeStruct((Mp, Np), out_dtype),
        grid_spec=pltpu.PrefetchScalarGridSpec(
            num_scalar_prefetch=0,
            grid=grid,
            in_specs=in_specs,
            out_specs=pl.BlockSpec((tm, tn), lambda m, n, k: (m, n)),
            scratch_shapes=[pltpu.VMEM((tm, tn), jnp.float32)],
        ),
        compiler_params=pltpu.CompilerParams(
            dimension_semantics=("parallel", "parallel", "arbitrary")),
    )(*args)

    return out_padded[:B, :OUT]


if __name__ == "__main__":
    key = jax.random.PRNGKey(0)
    kx, kw, kb, kd = jax.random.split(key, 4)

    # Small shapes consistent with the module: batch=8, input_dim=32, output_dim=16.
    B, IN_DIM, OUT_DIM = 8, 32, 16
    x = jax.random.normal(kx, (B, IN_DIM), dtype=jnp.float32)

    # Same init scheme as torch.nn.Linear: U(-1/sqrt(in), 1/sqrt(in)).
    bound = 1.0 / (IN_DIM ** 0.5)
    w = jax.random.uniform(kw, (OUT_DIM, IN_DIM), jnp.float32, -bound, bound)
    b = jax.random.uniform(kb, (OUT_DIM,), jnp.float32, -bound, bound)

    # Dropout randomness: uniform int32 bits (threshold compare happens in-kernel).
    bits = jax.random.randint(kd, (B, IN_DIM), 0, jnp.iinfo(jnp.int32).max,
                              dtype=jnp.int32)

    # Train-mode forward (dropout active, as in nn.Module default training state),
    # checked against a pure-JAX reference that uses the same mask.
    out_train = jax.block_until_ready(single_model_forward(x, w, b, bits, training=True))
    keep = bits < KEEP_THRESHOLD_I32
    ref_train = (jnp.where(keep, x, 0.0) @ w.T) * (1.0 / KEEP_PROB) + b
    assert out_train.shape == (B, OUT_DIM)
    assert jnp.allclose(out_train, ref_train, atol=1e-4, rtol=1e-4)

    # Eval-mode forward (dropout = identity).
    out_eval = jax.block_until_ready(single_model_forward(x, w, b, training=False))
    ref_eval = x @ w.T + b
    assert jnp.allclose(out_eval, ref_eval, atol=1e-5, rtol=1e-5)

    # bf16 MXU-operand path (recommended on v6e / v7x); f32 accumulation keeps accuracy.
    out_bf16 = jax.block_until_ready(
        single_model_forward(x, w, b, bits, training=True, compute_dtype=jnp.bfloat16))
    assert jnp.allclose(out_bf16, ref_train, atol=1e-1, rtol=1e-1)

    print("KERNEL_OK")
</pallas_src>

<mosaic_0001>
module attributes {stable_mosaic.version = 11 : i64} {
  func.func @_dropout_linear_kernel(%arg0: i32, %arg1: i32, %arg2: i32, %arg3: memref<8x128xi32, #tpu.memory_space<vmem>>, %arg4: memref<8x128xf32, #tpu.memory_space<vmem>>, %arg5: memref<128x128xf32, #tpu.memory_space<vmem>>, %arg6: memref<1x128xf32, #tpu.memory_space<vmem>>, %arg7: memref<8x128xf32, #tpu.memory_space<vmem>>, %arg8: memref<8x128xf32, #tpu.memory_space<vmem>>) attributes {dimension_semantics = [#tpu.dimension_semantics<parallel>, #tpu.dimension_semantics<parallel>, #tpu.dimension_semantics<arbitrary>], iteration_bounds = array<i64: 1, 1, 1>, scalar_prefetch = 0 : i64, scratch_operands = 1 : i64, tpu.core_type = #tpu.core_type<tc>, window_params = [{transform_indices = @transform_0, window_bounds = array<i64: 8, 128>}, {transform_indices = @transform_1, window_bounds = array<i64: 8, 128>}, {transform_indices = @transform_2, window_bounds = array<i64: 128, 128>}, {transform_indices = @transform_3, window_bounds = array<i64: 1, 128>}, {transform_indices = @transform_4, window_bounds = array<i64: 8, 128>}]} {
    %c0_i32 = arith.constant 0 : i32
    %0 = arith.cmpi eq, %arg2, %c0_i32 : i32
    %1 = arith.extui %0 : i1 to i32
    %c0_i32_0 = arith.constant 0 : i32
    %2 = arith.cmpi ne, %1, %c0_i32_0 : i32
    scf.if %2 {
      %cst_13 = arith.constant 0.000000e+00 : f32
      %17 = vector.broadcast %cst_13 : f32 to vector<8x128xf32>
      %c0_14 = arith.constant 0 : index
      %c0_15 = arith.constant 0 : index
      %18 = vector.load %arg8[%c0_14, %c0_15] : memref<8x128xf32, #tpu.memory_space<vmem>>, vector<8x128xf32>
      tpu.vector_store %arg8[%c0_14, %c0_15], %17 {strides = array<i32>} : memref<8x128xf32, #tpu.memory_space<vmem>>, vector<8x128xf32>,
    } else {
    }
    %c0 = arith.constant 0 : index
    %c0_1 = arith.constant 0 : index
    %3 = vector.load %arg4[%c0, %c0_1] : memref<8x128xf32, #tpu.memory_space<vmem>>, vector<8x128xf32>
    %c0_2 = arith.constant 0 : index
    %c0_3 = arith.constant 0 : index
    %4 = vector.load %arg3[%c0_2, %c0_3] : memref<8x128xi32, #tpu.memory_space<vmem>>, vector<8x128xi32>
    %c858993458_i32 = arith.constant 858993458 : i32
    %5 = vector.broadcast %c858993458_i32 : i32 to vector<8x128xi32>
    %6 = arith.cmpi slt, %4, %5 : vector<8x128xi32>
    %cst = arith.constant 0.000000e+00 : f32
    %7 = vector.broadcast %cst : f32 to vector<8x128xf32>
    %8 = arith.select %6, %3, %7 : vector<8x128xi1>, vector<8x128xf32>
    %c0_4 = arith.constant 0 : index
    %c0_5 = arith.constant 0 : index
    %9 = vector.load %arg8[%c0_4, %c0_5] : memref<8x128xf32, #tpu.memory_space<vmem>>, vector<8x128xf32>
    %c0_6 = arith.constant 0 : index
    %c0_7 = arith.constant 0 : index
    %10 = vector.load %arg5[%c0_6, %c0_7] : memref<128x128xf32, #tpu.memory_space<vmem>>, vector<128x128xf32>
    %cst_8 = arith.constant dense<0.000000e+00> : vector<8x128xf32>
    %11 = tpu.matmul %8, %10, %cst_8 {dimension_numbers = #tpu.dot_dimension_numbers<[1], [0], [0], [1], [0, 0, 1, 1], [], []>} : vector<8x128xf32>, vector<128x128xf32>, vector<8x128xf32> -> vector<8x128xf32>
    %12 = arith.addf %9, %11 : vector<8x128xf32>
    %c0_9 = arith.constant 0 : index
    %c0_10 = arith.constant 0 : index
    %13 = vector.load %arg8[%c0_9, %c0_10] : memref<8x128xf32, #tpu.memory_space<vmem>>, vector<8x128xf32>
    tpu.vector_store %arg8[%c0_9, %c0_10], %12 {strides = array<i32>} : memref<8x128xf32, #tpu.memory_space<vmem>>, vector<8x128xf32>,
    %c0_i32_11 = arith.constant 0 : i32
    %14 = arith.cmpi eq, %arg2, %c0_i32_11 : i32
    %15 = arith.extui %14 : i1 to i32
    %c0_i32_12 = arith.constant 0 : i32
    %16 = arith.cmpi ne, %15, %c0_i32_12 : i32
    scf.if %16 {
      %c0_13 = arith.constant 0 : index
      %c0_14 = arith.constant 0 : index
      %17 = vector.load %arg8[%c0_13, %c0_14] : memref<8x128xf32, #tpu.memory_space<vmem>>, vector<8x128xf32>
      %cst_15 = arith.constant 2.500000e+00 : f32
      %18 = vector.broadcast %cst_15 : f32 to vector<8x128xf32>
      %19 = arith.mulf %17, %18 : vector<8x128xf32>
      %c0_16 = arith.constant 0 : index
      %c0_17 = arith.constant 0 : index
      %20 = vector.load %arg6[%c0_16, %c0_17] : memref<1x128xf32, #tpu.memory_space<vmem>>, vector<1x128xf32>
      %21 = vector.broadcast %20 : vector<1x128xf32> to vector<8x128xf32>
      %22 = arith.addf %19, %21 : vector<8x128xf32>
      %c0_18 = arith.constant 0 : index
      %c0_19 = arith.constant 0 : index
      %23 = vector.load %arg7[%c0_18, %c0_19] : memref<8x128xf32, #tpu.memory_space<vmem>>, vector<8x128xf32>
      tpu.vector_store %arg7[%c0_18, %c0_19], %22 {strides = array<i32>} : memref<8x128xf32, #tpu.memory_space<vmem>>, vector<8x128xf32>,
    } else {
    }
    return
  }
  func.func @transform_0(%arg0: i32, %arg1: i32, %arg2: i32) -> (i32, i32) {
    %c0_i32 = arith.constant 0 : i32
    return %arg0, %arg2 : i32, i32
  }
  func.func @transform_1(%arg0: i32, %arg1: i32, %arg2: i32) -> (i32, i32) {
    %c0_i32 = arith.constant 0 : i32
    return %arg0, %arg2 : i32, i32
  }
  func.func @transform_2(%arg0: i32, %arg1: i32, %arg2: i32) -> (i32, i32) {
    %c0_i32 = arith.constant 0 : i32
    return %arg2, %arg1 : i32, i32
  }
  func.func @transform_3(%arg0: i32, %arg1: i32, %arg2: i32) -> (i32, i32) {
    %c0_i32 = arith.constant 0 : i32
    %c0_i32_0 = arith.constant 0 : i32
    return %c0_i32, %arg1 : i32, i32
  }
  func.func @transform_4(%arg0: i32, %arg1: i32, %arg2: i32) -> (i32, i32) {
    %c0_i32 = arith.constant 0 : i32
    return %arg0, %arg1 : i32, i32
  }
}

</mosaic_0001>

<bundles_post_ra>
// kernel: tpu_custom_call.1
= control target key start
LH: loop header
LB: loop body
LE: loop exit
PB: predicated region body
PF: predicated region fallthrough
CT: control target
= control target key end

     0   :  { %9 = vsyncpa [#allocation4], 0  ;;  %s449_s0 = inlined_call_operand.hbm [shape: s32[8,128], index: 0, kind: input, shape index: {}]   ;;  %s450_s1 = inlined_call_operand.hbm [shape: f32[8,128], index: 1, kind: input, shape index: {}]   ;;  %s451_s2 = inlined_call_operand.hbm [shape: f32[128,128], index: 2, kind: input, shape index: {}]   ;;  %s452_s3 = inlined_call_operand.vmem [shape: f32[1,128], index: 3, kind: input, shape index: {}]   ;;  %s453_s4 = inlined_call_operand.hbm [shape: f32[8,128], index: 4, kind: output, shape index: {}]  }
   0x1   :  { %10 = vsyncpa [#allocation7], 0 }
   0x2   :  { %11 = vsyncpa [#allocation5], 0  ;;  %s364_s15 = smov [#allocation6]   ;;  %s365_s17 = smov [#allocation3]  }
   0x3   :  { %s28_s16 = sshll.u32 %s364_s15, 4  ;;  %s18_s18 = sshll.u32 %s365_s17, 4  ;;  %s29_s16 = int_to_ptr.vmem [resolvable:$true] %s28_s16  ;;  %s19_s18 = int_to_ptr.vmem [resolvable:$true] %s18_s18 }
   0x4   :  { %s270_s21 = scalar_lea.hbm %s450_s1, 128 }
   0x5   :  { %p271_p0 = scmp.ne.s32.totalorder %s450_s1, %s270_s21  ;;  %p274_p1 = scmp.lt.u32.totalorder %s270_s21, %s450_s1 }
   0x7   :  { %p276_p2 = pnand %p274_p1, %p271_p0 }
   0x9   :  { %279 = shalt.err (!%p276_p2)
}
   0xa   :  { %s280_s26 = scalar_lea.vmem %s29_s16, 128  ;;  %p285_p4 = scmp.lt.s32.totalorder %s29_s16, %s29_s16 }
   0xb   :  { %p281_p3 = scmp.ne.s32.totalorder %s29_s16, %s280_s26  ;;  %p286_p5 = scmp.lt.s32.totalorder %s280_s26, %s280_s26 }
   0xd   :  { %p287_p6 = por %p286_p5, %p285_p4 }
   0xf   :  { %p288_p7 = pnand %p287_p6, %p281_p3 }
  0x11   :  { %291 = shalt.err (!%p288_p7)
}
  0x12   :  { %31 = dma.hbm_to_vmem [thread:$0]  %s450_s1, 128, %s29_s16, [#allocation7]  }
  0x13   :  { %s292_s5 = scalar_lea.hbm %s449_s0, 128 }
  0x14   :  { %p293_p8 = scmp.ne.s32.totalorder %s449_s0, %s292_s5  ;;  %p296_p9 = scmp.lt.u32.totalorder %s292_s5, %s449_s0 }
  0x16   :  { %p298_p10 = pnand %p296_p9, %p293_p8 }
  0x18   :  { %301 = shalt.err (!%p298_p10)
}
  0x19   :  { %s302_s10 = scalar_lea.vmem %s19_s18, 128  ;;  %p307_p12 = scmp.lt.s32.totalorder %s19_s18, %s19_s18 }
  0x1a   :  { %p303_p11 = scmp.ne.s32.totalorder %s19_s18, %s302_s10  ;;  %p308_p13 = scmp.lt.s32.totalorder %s302_s10, %s302_s10 }
  0x1c   :  { %p309_p0 = por %p308_p13, %p307_p12 }
  0x1e   :  { %p310_p1 = pnand %p309_p0, %p303_p11 }
  0x20   :  { %313 = shalt.err (!%p310_p1)
}
  0x21   :  { %21 = dma.hbm_to_vmem [thread:$0]  %s449_s0, 128, %s19_s18, [#allocation4]  }
  0x22   :  { %s366_s12 = smov [#allocation8]   ;;  %s314_s16 = scalar_lea.hbm %s451_s2, 2048 }
  0x23   :  { %s37_s13 = sshll.u32 %s366_s12, 4  ;;  %p315_p2 = scmp.ne.s32.totalorder %s451_s2, %s314_s16  ;;  %s38_s13 = int_to_ptr.vmem [resolvable:$true] %s37_s13 }
  0x24   :  { %p318_p3 = scmp.lt.u32.totalorder %s314_s16, %s451_s2 }
  0x26   :  { %p320_p4 = pnand %p318_p3, %p315_p2 }
  0x28   :  { %323 = shalt.err (!%p320_p4)
}
  0x29   :  { %s324_s22 = scalar_lea.vmem %s38_s13, 2048  ;;  %p329_p6 = scmp.lt.s32.totalorder %s38_s13, %s38_s13 }
  0x2a   :  { %p325_p5 = scmp.ne.s32.totalorder %s38_s13, %s324_s22  ;;  %p330_p7 = scmp.lt.s32.totalorder %s324_s22, %s324_s22 }
  0x2c   :  { %p331_p8 = por %p330_p7, %p329_p6 }
  0x2e   :  { %p332_p9 = pnand %p331_p8, %p325_p5 }
  0x30   :  { %335 = shalt.err (!%p332_p9)
}
  0x31   :  { %s367_s0 = smov 128   ;;  %s368_s18 = smov 8  }
  0x32   :  { %43 = dma.hbm_to_vmem [thread:$0]  %s451_s2, 2048, %s38_s13, [#allocation7], %s367_s0, %s367_s0, %s368_s18  }
  0x33   :  { %358 = dma.done.wait [#allocation4], 128  }
  0x34   :  { %359 = vsyncadd [#allocation4], 4294967168 }
  0x35   :  { %360 = dma.done.wait [#allocation7], 2176  }
  0x36   :  { %361 = vsyncadd [#allocation7], 4294965120  ;;  %v369_v0 = vmov 0.0|0.0   ;;  %vm370_vm0 = vmmov 0   ;;  %v371_v1 = vmov 0.0   ;;  %v65_v2 = vld [vmem:[#allocation8] sm:$0xff] }
  0x37   :  { %237 = vmatprep.subr.bf16.mxu0 %v369_v0  ;;  %234 = vmatprep.mubr.msk.f32.mxu0 %vm370_vm0, %v371_v1  ;;  %v66_v3 = vld [vmem:[#allocation8 + $0x8] sm:$0xff]  ;;  %v67_v4 = vld [vmem:[#allocation8 + $0x10] sm:$0xff]  ;;  %v68_v6 = vld [vmem:[#allocation8 + $0x18] sm:$0xff]  ;;  %s372_s26 = smov [#allocation9]  }
  0x38   :  { %v238_v5 = vpack.c.bf16 %v66_v3, %v65_v2  ;;  %v241_v7 = vpack.c.bf16 %v68_v6, %v67_v4  ;;  %v69_v8 = vld [vmem:[#allocation8 + $0x20] sm:$0xff]  ;;  %v70_v9 = vld [vmem:[#allocation8 + $0x28] sm:$0xff]  ;;  %v71_v11 = vld [vmem:[#allocation8 + $0x30] sm:$0xff]  ;;  %s173_s27 = sshll.u32 %s372_s26, 4  ;;  %s174_s27 = int_to_ptr.vmem [resolvable:$true] %s173_s27 }
  0x39   :  { %v244_v10 = vpack.c.bf16 %v70_v9, %v69_v8  ;;  %v72_v12 = vld [vmem:[#allocation8 + $0x38] sm:$0xff]  ;;  %v73_v14 = vld [vmem:[#allocation8 + $0x40] sm:$0xff]  ;;  %v74_v15 = vld [vmem:[#allocation8 + $0x48] sm:$0xff]  ;;  %s336_s28 = scalar_lea.vmem %s174_s27, 128  ;;  %p341_p11 = scmp.lt.s32.totalorder %s174_s27, %s174_s27 }
  0x3a   :  { %239 = vmatpush3.bf16.msra.mxu0 %v238_v5  ;;  %v247_v13 = vpack.c.bf16 %v72_v12, %v71_v11  ;;  %v250_v16 = vpack.c.bf16 %v74_v15, %v73_v14  ;;  %v75_v17 = vld [vmem:[#allocation8 + $0x50] sm:$0xff]  ;;  %v76_v18 = vld [vmem:[#allocation8 + $0x58] sm:$0xff]  ;;  %v77_v20 = vld [vmem:[#allocation8 + $0x60] sm:$0xff]  ;;  %p337_p10 = scmp.ne.s32.totalorder %s174_s27, %s336_s28  ;;  %p342_p12 = scmp.lt.s32.totalorder %s336_s28, %s336_s28 }
  0x3b   :  { %240 = vmatprep.subr.bf16.mxu0 %v369_v0  ;;  %v253_v19 = vpack.c.bf16 %v76_v18, %v75_v17  ;;  %v78_v21 = vld [vmem:[#allocation8 + $0x68] sm:$0xff]  ;;  %v79_v23 = vld [vmem:[#allocation8 + $0x70] sm:$0xff]  ;;  %v80_v24 = vld [vmem:[#allocation8 + $0x78] sm:$0xff] }
  0x3c   :  { %v256_v22 = vpack.c.bf16 %v78_v21, %v77_v20  ;;  %v259_v25 = vpack.c.bf16 %v80_v24, %v79_v23  ;;  %v61_v26 = vld [vmem:[#allocation3] sm:$0xff]  ;;  %v60_v27 = vld [vmem:[#allocation6] sm:$0xff]  ;;  %p343_p13 = por %p342_p12, %p341_p11 }
  0x3d   :  { %vm62_vm1 = vcmp.lt.s32.totalorder %v61_v26, 858993458  ;;  %v184_v29 = vld [vmem:[%s452_s3] ss:$0 sm:$0xff] }
  0x3e   :  { %242 = vmatpush3.bf16.msra.mxu0 %v241_v7  ;;  %p344_p0 = pnand %p343_p13, %p337_p10 }
  0x3f   :  { %243 = vmatprep.subr.bf16.mxu0 %v369_v0 }
  0x42   :  { %245 = vmatpush3.bf16.msra.mxu0 %v244_v10 }
  0x43   :  { %246 = vmatprep.subr.bf16.mxu0 %v369_v0 }
  0x46   :  { %248 = vmatpush3.bf16.msra.mxu0 %v247_v13 }
  0x47   :  { %249 = vmatprep.subr.bf16.mxu0 %v369_v0 }
  0x4a   :  { %251 = vmatpush3.bf16.msra.mxu0 %v250_v16 }
  0x4b   :  { %252 = vmatprep.subr.bf16.mxu0 %v369_v0 }
  0x4e   :  { %254 = vmatpush3.bf16.msra.mxu0 %v253_v19 }
  0x4f   :  { %255 = vmatprep.subr.bf16.mxu0 %v369_v0 }
  0x52   :  { %257 = vmatpush3.bf16.msra.mxu0 %v256_v22 }
  0x53   :  { %258 = vmatprep.subr.bf16.mxu0 %v369_v0 }
  0x56   :  { %260 = vmatpush3.bf16.msra.mxu0 %v259_v25 }
  0x59   :  { %235 = vmatmul.mubr.msk.f32.vlgmr.msra.gmra.mrb[0].mxu0 %vm62_vm1, %v60_v27 }
 0x12c   :  { %v147_v28 = vpop.f32.mrb[0].mxu0 }
 0x12d   :  { %v157_v30 = vmul.f32 2.5, %v147_v28  ;;  %v236_v31 = vpop.f32.mrb[1].mxu0 }
 0x12f   :  { %v165_v32 = vadd.f32 %v184_v29, %v157_v30 }
 0x131   :  { %166 = vst [vmem:[#allocation9] sm:$0xff] %v165_v32 }
 0x132   :  { %347 = shalt.err (!%p344_p0)
}
 0x133   :  { %s348_s5 = scalar_lea.hbm %s453_s4, 128 }
 0x134   :  { %p349_p1 = scmp.ne.s32.totalorder %s453_s4, %s348_s5  ;;  %p352_p2 = scmp.lt.u32.totalorder %s348_s5, %s453_s4 }
 0x136   :  { %p354_p3 = pnand %p352_p2, %p349_p1 }
 0x138   :  { %357 = shalt.err (!%p354_p3)
}
 0x139   :  { %176 = dma.vmem_to_hbm [thread:$0]  %s174_s27, 128, %s453_s4, [#allocation5]  }
 0x13a   :  { %362 = dma.done.wait [#allocation5], 128  }
 0x13b   :  { %363 = vsyncadd [#allocation5], 4294967168 }
 0x13c   :  { %180 = vsyncpa [#allocation4], 1 }
 0x13d   :  { %181 = vsyncpa [#allocation7], 1 }
 0x13e   :  { %182 = vsyncpa [#allocation5], 1 }

</bundles_post_ra>
